<compile_context>
chip_gen: v7x
topology: tpu7x:2x2x1
jax: 0.10.0
libtpu: 0.0.40
codegen_flags: <defaults>
</compile_context>

<pallas_src>
import functools

import jax
import jax.numpy as jnp
from jax.experimental import pallas as pl
from jax.experimental.pallas import tpu as pltpu


def _round_up(x, m):
    return ((x + m - 1) // m) * m


def momentum_forward_kernel(targets_ref, samples_ref, sums_ref, out_ref, acc_ref,
                            *, bf16_matmul):
    """Accumulate one (tc, td) tile of per-class feature sums over batch tiles.

    targets_ref : (1, tb)  int32   -- labels of this batch tile (padded w/ C_pad)
    samples_ref : (tb, td) float32 -- batch_samples tile
    sums_ref    : (tc, td) float32 -- existing class_sums tile (aliased w/ out)
    out_ref     : (tc, td) float32 -- updated class_sums tile
    acc_ref     : (tc, td) float32 -- VMEM scratch accumulator
    """
    b = pl.program_id(2)
    nb = pl.num_programs(2)
    tc = acc_ref.shape[0]
    tb = samples_ref.shape[0]

    @pl.when(b == 0)
    def _():
        acc_ref[...] = jnp.zeros_like(acc_ref)

    # One-hot built only for this (class-tile x batch-tile).
    c0 = pl.program_id(0) * tc
    class_ids = c0 + jax.lax.broadcasted_iota(jnp.int32, (tc, tb), 0)
    tgt = jnp.broadcast_to(targets_ref[...], (tc, tb))
    if bf16_matmul:
        onehot = (class_ids == tgt).astype(jnp.bfloat16)   # exact in bf16
        samples = samples_ref[...].astype(jnp.bfloat16)    # opt-in precision tradeoff
    else:
        onehot = (class_ids == tgt).astype(samples_ref.dtype)
        samples = samples_ref[...]

    # Scatter-add == one_hot @ samples on the MXU, f32 accumulation.
    acc_ref[...] += jnp.dot(onehot, samples, preferred_element_type=jnp.float32)

    @pl.when(b == nb - 1)
    def _():
        out_ref[...] = (sums_ref[...] + acc_ref[...]).astype(out_ref.dtype)


def momentum_forward(batch_samples, targets, class_sums, *,
                     tc_max=256, td_max=512, tb_max=256,
                     bf16_matmul=False,
                     vmem_limit_bytes=32 * 1024 * 1024):
    """Functional MomentumCalcHead.forward: returns new class_sums.

    Tile caps (tc_max, td_max, tb_max) default to sizes that double-buffer
    comfortably within v7x's 64 MiB VMEM; they can be raised on v5e/v6e.
    """
    B, D = batch_samples.shape
    C, D2 = class_sums.shape
    assert D == D2, (D, D2)

    # Hardware-friendly tile sizes: tc sublane-aligned, td/tb lane/MXU-aligned.
    tc = min(_round_up(C, 8), tc_max)
    td = min(_round_up(D, 128), td_max)
    tb = min(_round_up(B, 128), tb_max)
    C_pad = _round_up(C, tc)
    D_pad = _round_up(D, td)
    B_pad = _round_up(B, tb)

    samples = batch_samples.astype(jnp.float32)
    if (B_pad, D_pad) != (B, D):
        samples = jnp.pad(samples, ((0, B_pad - B), (0, D_pad - D)))
    sums = class_sums.astype(jnp.float32)
    if (C_pad, D_pad) != (C, D):
        sums = jnp.pad(sums, ((0, C_pad - C), (0, D_pad - D)))
    # Batch padding gets an out-of-range label so it contributes nothing.
    tgt = jnp.full((1, B_pad), C_pad, dtype=jnp.int32)
    tgt = tgt.at[0, :B].set(targets.astype(jnp.int32))

    grid = (C_pad // tc, D_pad // td, B_pad // tb)

    out = pl.pallas_call(
        functools.partial(momentum_forward_kernel, bf16_matmul=bf16_matmul),
        out_shape=jax.ShapeDtypeStruct((C_pad, D_pad), jnp.float32),
        grid=grid,
        in_specs=[
            pl.BlockSpec((1, tb), lambda c, d, b: (0, b)),     # targets
            pl.BlockSpec((tb, td), lambda c, d, b: (b, d)),    # batch_samples
            pl.BlockSpec((tc, td), lambda c, d, b: (c, d)),    # class_sums (in)
        ],
        out_specs=pl.BlockSpec((tc, td), lambda c, d, b: (c, d)),
        scratch_shapes=[pltpu.VMEM((tc, td), jnp.float32)],
        input_output_aliases={2: 0},   # donate class_sums buffer to the output
        compiler_params=pltpu.CompilerParams(
            dimension_semantics=("parallel", "parallel", "arbitrary"),
            vmem_limit_bytes=vmem_limit_bytes,
        ),
    )(tgt, samples, sums)

    if (C_pad, D_pad) != (C, D):
        out = out[:C, :D]
    return out.astype(class_sums.dtype)


class MomentumCalcHeadJax:
    """Deterministic JAX re-init of the PyTorch module's parameters/buffers."""

    def __init__(self, feat_dim, cls_positive, T=0.55, gamma=0.7, key=None):
        key = jax.random.PRNGKey(0) if key is None else key
        k1, k2, k3 = jax.random.split(key, 3)
        self.cls_positive = jnp.asarray(cls_positive, dtype=jnp.float32)
        self.num_class = len(cls_positive)
        self.feat_dim = feat_dim
        self.T = T
        self.gamma = gamma
        # buffers (deterministic synthetic init, mirroring __init__ shapes)
        self.class_sums = jnp.zeros((self.num_class, self.feat_dim), jnp.float32)
        self.kappa = jax.random.normal(k1, (self.num_class,), jnp.float32)
        self.norm_constant = jax.random.uniform(k2, (self.num_class,), jnp.float32)
        self.m_weights = jnp.ones((self.num_class,), jnp.float32) * 0.5
        v = jax.random.normal(k3, (self.num_class, self.feat_dim), jnp.float32)
        self.vmf_vectors = v / jnp.linalg.norm(v, axis=-1, keepdims=True)

    def forward(self, batch_samples, targets, idx=None):
        # Hot path (the whole torch forward) runs in the Pallas kernel.
        self.class_sums = momentum_forward(batch_samples, targets, self.class_sums)
        return None  # PyTorch forward returns nothing; state is updated.

    # TODO(synk): update_kappa / get_kappa_weights / get_sample_weights /
    # update_weights are tiny (num_class,)-sized bookkeeping ops outside
    # forward(); they have no meaningful Pallas hot path and are left to plain JAX.

    # TODO(synk): for very large num_class with sparse label occupancy, add a
    # PrefetchScalarGridSpec per-(class-tile, batch-tile) hit-count and skip
    # empty tiles with @pl.when(count > 0).


if __name__ == "__main__":
    key = jax.random.PRNGKey(0)
    k_samp, k_tgt, k_sums = jax.random.split(key, 3)

    batch = 8
    feat_dim = 32
    cls_positive = [10, 20, 30, 40]  # num_class = 4
    num_class = len(cls_positive)

    batch_samples = jax.random.normal(k_samp, (batch, feat_dim), jnp.float32)
    targets = jax.random.randint(k_tgt, (batch,), 0, num_class, jnp.int32)
    idx = jnp.arange(batch, dtype=jnp.int32)

    # Pure-JAX reference of the scatter-add semantics (computed up front).
    onehot = jax.nn.one_hot(targets, num_class, dtype=jnp.float32)   # (B, C)
    scatter_ref = onehot.T @ batch_samples                           # (C, D)

    # (1) zero-initialized class_sums via the module wrapper.
    head = MomentumCalcHeadJax(feat_dim, cls_positive)
    head.forward(batch_samples, targets, idx)
    out0 = jax.block_until_ready(head.class_sums)
    assert out0.shape == (num_class, feat_dim)
    assert jnp.allclose(out0, scatter_ref, atol=1e-5, rtol=1e-5)

    # (2) nonzero existing class_sums: exercises the "sums + scatter" path.
    init_sums = jax.random.normal(k_sums, (num_class, feat_dim), jnp.float32)
    ref1 = init_sums + scatter_ref
    out1 = jax.block_until_ready(momentum_forward(batch_samples, targets, init_sums))
    assert jnp.allclose(out1, ref1, atol=1e-5, rtol=1e-5)

    # (3) two forward calls accumulate into the same buffer.
    head.forward(batch_samples, targets, idx)
    out2 = jax.block_until_ready(head.class_sums)
    assert jnp.allclose(out2, 2.0 * scatter_ref, atol=1e-5, rtol=1e-5)

    print("KERNEL_OK")
</pallas_src>

<mosaic_0001>
module attributes {stable_mosaic.version = 11 : i64} {
  func.func @momentum_forward_kernel(%arg0: i32, %arg1: i32, %arg2: i32, %arg3: memref<1x128xi32, #tpu.memory_space<vmem>>, %arg4: memref<128x128xf32, #tpu.memory_space<vmem>>, %arg5: memref<8x128xf32, #tpu.memory_space<vmem>>, %arg6: memref<8x128xf32, #tpu.memory_space<vmem>>, %arg7: memref<8x128xf32, #tpu.memory_space<vmem>>) attributes {dimension_semantics = [#tpu.dimension_semantics<parallel>, #tpu.dimension_semantics<parallel>, #tpu.dimension_semantics<arbitrary>], iteration_bounds = array<i64: 1, 1, 1>, scalar_prefetch = 0 : i64, scratch_operands = 1 : i64, tpu.core_type = #tpu.core_type<tc>, window_params = [{transform_indices = @transform_0, window_bounds = array<i64: 1, 128>}, {transform_indices = @transform_1, window_bounds = array<i64: 128, 128>}, {transform_indices = @transform_2, window_bounds = array<i64: 8, 128>}, {transform_indices = @transform_3, window_bounds = array<i64: 8, 128>}]} {
    %c0_i32 = arith.constant 0 : i32
    %0 = arith.cmpi eq, %arg2, %c0_i32 : i32
    %1 = arith.extui %0 : i1 to i32
    %c0_i32_0 = arith.constant 0 : i32
    %2 = arith.cmpi ne, %1, %c0_i32_0 : i32
    scf.if %2 {
      %cst_10 = arith.constant 0.000000e+00 : f32
      %21 = vector.broadcast %cst_10 : f32 to vector<8x128xf32>
      %c0_11 = arith.constant 0 : index
      %c0_12 = arith.constant 0 : index
      %22 = vector.load %arg7[%c0_11, %c0_12] : memref<8x128xf32, #tpu.memory_space<vmem>>, vector<8x128xf32>
      tpu.vector_store %arg7[%c0_11, %c0_12], %21 {strides = array<i32>} : memref<8x128xf32, #tpu.memory_space<vmem>>, vector<8x128xf32>,
    } else {
    }
    %c8_i32 = arith.constant 8 : i32
    %3 = arith.muli %arg0, %c8_i32 : i32
    %4 = tpu.iota {dimensions = array<i32: 0>} : vector<8x128xi32>
    %5 = vector.broadcast %3 : i32 to vector<8x128xi32>
    %6 = arith.addi %5, %4 : vector<8x128xi32>
    %c0 = arith.constant 0 : index
    %c0_1 = arith.constant 0 : index
    %7 = vector.load %arg3[%c0, %c0_1] : memref<1x128xi32, #tpu.memory_space<vmem>>, vector<1x128xi32>
    %8 = vector.shape_cast %7 : vector<1x128xi32> to vector<1x128xi32>
    %9 = vector.broadcast %8 : vector<1x128xi32> to vector<8x128xi32>
    %10 = arith.cmpi eq, %6, %9 : vector<8x128xi32>
    %11 = arith.extui %10 : vector<8x128xi1> to vector<8x128xi32>
    %12 = arith.sitofp %11 : vector<8x128xi32> to vector<8x128xf32>
    %c0_2 = arith.constant 0 : index
    %c0_3 = arith.constant 0 : index
    %13 = vector.load %arg4[%c0_2, %c0_3] : memref<128x128xf32, #tpu.memory_space<vmem>>, vector<128x128xf32>
    %c0_4 = arith.constant 0 : index
    %c0_5 = arith.constant 0 : index
    %14 = vector.load %arg7[%c0_4, %c0_5] : memref<8x128xf32, #tpu.memory_space<vmem>>, vector<8x128xf32>
    %cst = arith.constant dense<0.000000e+00> : vector<8x128xf32>
    %15 = tpu.matmul %12, %13, %cst {dimension_numbers = #tpu.dot_dimension_numbers<[1], [0], [0], [1], [0, 0, 1, 1], [], []>} : vector<8x128xf32>, vector<128x128xf32>, vector<8x128xf32> -> vector<8x128xf32>
    %16 = arith.addf %14, %15 : vector<8x128xf32>
    %c0_6 = arith.constant 0 : index
    %c0_7 = arith.constant 0 : index
    %17 = vector.load %arg7[%c0_6, %c0_7] : memref<8x128xf32, #tpu.memory_space<vmem>>, vector<8x128xf32>
    tpu.vector_store %arg7[%c0_6, %c0_7], %16 {strides = array<i32>} : memref<8x128xf32, #tpu.memory_space<vmem>>, vector<8x128xf32>,
    %c0_i32_8 = arith.constant 0 : i32
    %18 = arith.cmpi eq, %arg2, %c0_i32_8 : i32
    %19 = arith.extui %18 : i1 to i32
    %c0_i32_9 = arith.constant 0 : i32
    %20 = arith.cmpi ne, %19, %c0_i32_9 : i32
    scf.if %20 {
      %c0_10 = arith.constant 0 : index
      %c0_11 = arith.constant 0 : index
      %21 = vector.load %arg5[%c0_10, %c0_11] : memref<8x128xf32, #tpu.memory_space<vmem>>, vector<8x128xf32>
      %c0_12 = arith.constant 0 : index
      %c0_13 = arith.constant 0 : index
      %22 = vector.load %arg7[%c0_12, %c0_13] : memref<8x128xf32, #tpu.memory_space<vmem>>, vector<8x128xf32>
      %23 = arith.addf %21, %22 : vector<8x128xf32>
      %c0_14 = arith.constant 0 : index
      %c0_15 = arith.constant 0 : index
      %24 = vector.load %arg6[%c0_14, %c0_15] : memref<8x128xf32, #tpu.memory_space<vmem>>, vector<8x128xf32>
      tpu.vector_store %arg6[%c0_14, %c0_15], %23 {strides = array<i32>} : memref<8x128xf32, #tpu.memory_space<vmem>>, vector<8x128xf32>,
    } else {
    }
    return
  }
  func.func @transform_0(%arg0: i32, %arg1: i32, %arg2: i32) -> (i32, i32) {
    %c0_i32 = arith.constant 0 : i32
    %c0_i32_0 = arith.constant 0 : i32
    return %c0_i32, %arg2 : i32, i32
  }
  func.func @transform_1(%arg0: i32, %arg1: i32, %arg2: i32) -> (i32, i32) {
    %c0_i32 = arith.constant 0 : i32
    return %arg2, %arg1 : i32, i32
  }
  func.func @transform_2(%arg0: i32, %arg1: i32, %arg2: i32) -> (i32, i32) {
    %c0_i32 = arith.constant 0 : i32
    return %arg0, %arg1 : i32, i32
  }
  func.func @transform_3(%arg0: i32, %arg1: i32, %arg2: i32) -> (i32, i32) {
    %c0_i32 = arith.constant 0 : i32
    return %arg0, %arg1 : i32, i32
  }
}

</mosaic_0001>

<bundles_post_ra>
// kernel: tpu_custom_call.1
= control target key start
LH: loop header
LB: loop body
LE: loop exit
PB: predicated region body
PF: predicated region fallthrough
CT: control target
= control target key end

     0   :  { %8 = vsyncpa [#allocation4], 0  ;;  %s399_s0 = inlined_call_operand.vmem [shape: s32[1,128], index: 0, kind: input, shape index: {}]   ;;  %s400_s1 = inlined_call_operand.hbm [shape: f32[128,128], index: 1, kind: input, shape index: {}]   ;;  %s401_s2 = inlined_call_operand.hbm [shape: f32[8,128], index: 2, kind: input, shape index: {}, may-alias: {2,3}]   ;;  %s402_s3 = inlined_call_operand.hbm [shape: f32[8,128], index: 3, kind: output, shape index: {}, may-alias: {2,3}]  }
   0x1   :  { %9 = vsyncpa [#allocation7], 0 }
   0x2   :  { %10 = vsyncpa [#allocation5], 0  ;;  %s331_s12 = smov [#allocation3]   ;;  %s259_s16 = scalar_lea.hbm %s400_s1, 2048 }
   0x3   :  { %s18_s13 = sshll.u32 %s331_s12, 4  ;;  %p260_p0 = scmp.ne.s32.totalorder %s400_s1, %s259_s16  ;;  %s19_s13 = int_to_ptr.vmem [resolvable:$true] %s18_s13 }
   0x4   :  { %p263_p1 = scmp.lt.u32.totalorder %s259_s16, %s400_s1 }
   0x6   :  { %p265_p2 = pnand %p263_p1, %p260_p0 }
   0x8   :  { %268 = shalt.err (!%p265_p2)
}
   0x9   :  { %s269_s21 = scalar_lea.vmem %s19_s13, 2048  ;;  %p274_p4 = scmp.lt.s32.totalorder %s19_s13, %s19_s13 }
   0xa   :  { %p270_p3 = scmp.ne.s32.totalorder %s19_s13, %s269_s21  ;;  %p275_p5 = scmp.lt.s32.totalorder %s269_s21, %s269_s21 }
   0xc   :  { %p276_p6 = por %p275_p5, %p274_p4 }
   0xe   :  { %p277_p7 = pnand %p276_p6, %p270_p3 }
  0x10   :  { %280 = shalt.err (!%p277_p7)
}
  0x11   :  { %s332_s22 = smov 128   ;;  %s333_s23 = smov 8  }
  0x12   :  { %24 = dma.hbm_to_vmem [thread:$0]  %s400_s1, 2048, %s19_s13, [#allocation4], %s332_s22, %s332_s22, %s333_s23  }
  0x13   :  { %s334_s26 = smov [#allocation6]   ;;  %s281_s30 = scalar_lea.hbm %s401_s2, 128 }
  0x14   :  { %s31_s27 = sshll.u32 %s334_s26, 4  ;;  %p282_p8 = scmp.ne.s32.totalorder %s401_s2, %s281_s30  ;;  %s32_s27 = int_to_ptr.vmem [resolvable:$true] %s31_s27 }
  0x15   :  { %p285_p9 = scmp.lt.u32.totalorder %s281_s30, %s401_s2 }
  0x17   :  { %p287_p10 = pnand %p285_p9, %p282_p8 }
  0x19   :  { %290 = shalt.err (!%p287_p10)
}
  0x1a   :  { %s291_s8 = scalar_lea.vmem %s32_s27, 128  ;;  %p296_p12 = scmp.lt.s32.totalorder %s32_s27, %s32_s27 }
  0x1b   :  { %p292_p11 = scmp.ne.s32.totalorder %s32_s27, %s291_s8  ;;  %p297_p13 = scmp.lt.s32.totalorder %s291_s8, %s291_s8 }
  0x1d   :  { %p298_p0 = por %p297_p13, %p296_p12 }
  0x1f   :  { %p299_p1 = pnand %p298_p0, %p292_p11 }
  0x21   :  { %302 = shalt.err (!%p299_p1)
}
  0x22   :  { %34 = dma.hbm_to_vmem [thread:$0]  %s401_s2, 128, %s32_s27, [#allocation7]  }
  0x23   :  { %325 = dma.done.wait [#allocation4], 2048  }
  0x24   :  { %326 = vsyncadd [#allocation4], 4294965248 }
  0x25   :  { %327 = dma.done.wait [#allocation7], 128  }
  0x26   :  { %328 = vsyncadd [#allocation7], 4294967168  ;;  %v335_v0 = vmov 0.0|0.0   ;;  %vm336_vm0 = vmmov 0   ;;  %v337_v1 = vmov 0.0   ;;  %v59_v2 = vld [vmem:[#allocation3] sm:$0xff]  ;;  %v47_v23 = vlaneseq }
  0x27   :  { %226 = vmatprep.subr.bf16.mxu0 %v335_v0  ;;  %223 = vmatprep.mubr.msk.f32.mxu0 %vm336_vm0, %v337_v1  ;;  %v60_v3 = vld [vmem:[#allocation3 + $0x8] sm:$0xff]  ;;  %v61_v4 = vld [vmem:[#allocation3 + $0x10] sm:$0xff]  ;;  %v62_v6 = vld [vmem:[#allocation3 + $0x18] sm:$0xff]  ;;  %v338_v29 = vmov 1.0   ;;  %s339_s11 = smov [#allocation8]  }
  0x28   :  { %v227_v5 = vpack.c.bf16 %v60_v3, %v59_v2  ;;  %v230_v7 = vpack.c.bf16 %v62_v6, %v61_v4  ;;  %v63_v8 = vld [vmem:[#allocation3 + $0x20] sm:$0xff]  ;;  %v64_v9 = vld [vmem:[#allocation3 + $0x28] sm:$0xff]  ;;  %v65_v11 = vld [vmem:[#allocation3 + $0x30] sm:$0xff]  ;;  %v48_v27 = vshrl.u32 %v47_v23, 7  ;;  %s161_s12 = sshll.u32 %s339_s11, 4  ;;  %s162_s12 = int_to_ptr.vmem [resolvable:$true] %s161_s12 }
  0x29   :  { %v233_v10 = vpack.c.bf16 %v64_v9, %v63_v8  ;;  %v66_v12 = vld [vmem:[#allocation3 + $0x38] sm:$0xff]  ;;  %v67_v14 = vld [vmem:[#allocation3 + $0x40] sm:$0xff]  ;;  %v68_v15 = vld [vmem:[#allocation3 + $0x48] sm:$0xff]  ;;  %s303_s13 = scalar_lea.vmem %s162_s12, 128  ;;  %p308_p3 = scmp.lt.s32.totalorder %s162_s12, %s162_s12 }
  0x2a   :  { %228 = vmatpush3.bf16.msra.mxu0 %v227_v5  ;;  %v236_v13 = vpack.c.bf16 %v66_v12, %v65_v11  ;;  %v239_v16 = vpack.c.bf16 %v68_v15, %v67_v14  ;;  %v69_v17 = vld [vmem:[#allocation3 + $0x50] sm:$0xff]  ;;  %v70_v18 = vld [vmem:[#allocation3 + $0x58] sm:$0xff]  ;;  %v71_v20 = vld [vmem:[#allocation3 + $0x60] sm:$0xff]  ;;  %p304_p2 = scmp.ne.s32.totalorder %s162_s12, %s303_s13  ;;  %p309_p4 = scmp.lt.s32.totalorder %s303_s13, %s303_s13 }
  0x2b   :  { %229 = vmatprep.subr.bf16.mxu0 %v335_v0  ;;  %v242_v19 = vpack.c.bf16 %v70_v18, %v69_v17  ;;  %v72_v21 = vld [vmem:[#allocation3 + $0x68] sm:$0xff]  ;;  %v73_v24 = vld [vmem:[#allocation3 + $0x70] sm:$0xff]  ;;  %v74_v25 = vld [vmem:[#allocation3 + $0x78] sm:$0xff] }
  0x2c   :  { %v245_v22 = vpack.c.bf16 %v72_v21, %v71_v20  ;;  %v248_v26 = vpack.c.bf16 %v74_v25, %v73_v24  ;;  %v171_v28 = vld [vmem:[%s399_s0] ss:$0 sm:$0xff]  ;;  %p310_p5 = por %p309_p4, %p308_p3 }
  0x2d   :  { %vm56_vm1 = vcmp.eq.s32.totalorder %v48_v27, %v171_v28  ;;  %v151_v30 = vld [vmem:[#allocation6] sm:$0xff] }
  0x2e   :  { %231 = vmatpush3.bf16.msra.mxu0 %v230_v7  ;;  %p311_p6 = pnand %p310_p5, %p304_p2 }
  0x2f   :  { %232 = vmatprep.subr.bf16.mxu0 %v335_v0 }
  0x32   :  { %234 = vmatpush3.bf16.msra.mxu0 %v233_v10 }
  0x33   :  { %235 = vmatprep.subr.bf16.mxu0 %v335_v0 }
  0x36   :  { %237 = vmatpush3.bf16.msra.mxu0 %v236_v13 }
  0x37   :  { %238 = vmatprep.subr.bf16.mxu0 %v335_v0 }
  0x3a   :  { %240 = vmatpush3.bf16.msra.mxu0 %v239_v16 }
  0x3b   :  { %241 = vmatprep.subr.bf16.mxu0 %v335_v0 }
  0x3e   :  { %243 = vmatpush3.bf16.msra.mxu0 %v242_v19 }
  0x3f   :  { %244 = vmatprep.subr.bf16.mxu0 %v335_v0 }
  0x42   :  { %246 = vmatpush3.bf16.msra.mxu0 %v245_v22 }
  0x43   :  { %247 = vmatprep.subr.bf16.mxu0 %v335_v0 }
  0x46   :  { %249 = vmatpush3.bf16.msra.mxu0 %v248_v26 }
  0x49   :  { %224 = vmatmul.mubr.msk.f32.vlgmr.msra.gmra.mrb[0].mxu0 %vm56_vm1, %v338_v29 }
 0x11c   :  { %v142_v31 = vpop.f32.mrb[0].mxu0 }
 0x11d   :  { %v153_v32 = vadd.f32 %v151_v30, %v142_v31  ;;  %v225_v33 = vpop.f32.mrb[1].mxu0 }
 0x11f   :  { %154 = vst [vmem:[#allocation8] sm:$0xff] %v153_v32 }
 0x120   :  { %314 = shalt.err (!%p311_p6)
}
 0x121   :  { %s315_s15 = scalar_lea.hbm %s402_s3, 128 }
 0x122   :  { %p316_p7 = scmp.ne.s32.totalorder %s402_s3, %s315_s15  ;;  %p319_p8 = scmp.lt.u32.totalorder %s315_s15, %s402_s3 }
 0x124   :  { %p321_p9 = pnand %p319_p8, %p316_p7 }
 0x126   :  { %324 = shalt.err (!%p321_p9)
}
 0x127   :  { %164 = dma.vmem_to_hbm [thread:$0]  %s162_s12, 128, %s402_s3, [#allocation5]  }
 0x128   :  { %329 = dma.done.wait [#allocation5], 128  }
 0x129   :  { %330 = vsyncadd [#allocation5], 4294967168 }
 0x12a   :  { %168 = vsyncpa [#allocation4], 1 }
 0x12b   :  { %169 = vsyncpa [#allocation7], 1 }
 0x12c   :  { %170 = vsyncpa [#allocation5], 1 }

</bundles_post_ra>
